<compile_context>
chip_gen: v7x
topology: tpu7x:2x2x1
jax: 0.10.0
libtpu: 0.0.40
codegen_flags: <defaults>
</compile_context>

<pallas_src>
import math

import jax
import jax.numpy as jnp
from jax.experimental import pallas as pl
from jax.experimental.pallas import tpu as pltpu


# PyTorch nn.GELU defaults to the exact erf form -> approximate=False.
_ACTIVATIONS = {
    "relu": lambda v: jnp.maximum(v, 0.0),
    "tanh": jnp.tanh,
    "sigmoid": jax.nn.sigmoid,
    "gelu": lambda v: jax.nn.gelu(v, approximate=False),
    None: None,
}

_TB_MAX = 1024


def _round_up(x, m):
    return ((x + m - 1) // m) * m


def _cdiv(a, b):
    return -(-a // b)


def _vmem_capacity_bytes():
    """Physical VMEM of the local chip; conservative 64 MiB (v7x) fallback."""
    try:
        cap = getattr(pltpu.get_tpu_info(), "vmem_capacity_bytes", None)
        if cap:
            return int(cap)
    except Exception:
        pass
    return 64 * 1024 * 1024


def _make_mlp_kernel(activation_names, num_layers):
    """Fused MLP kernel. Ref order: x, (w0, b0), ..., (w_last, b_last), out."""
    acts = [_ACTIVATIONS[n] for n in activation_names]

    def kernel(*refs):
        x_ref = refs[0]
        out_ref = refs[-1]
        param_refs = refs[1:-1]
        assert len(param_refs) == 2 * num_layers

        # x arrives f32; cast to bf16 in-kernel (VPU slot has slack) so the
        # wrapper does not burn an extra HBM pass re-writing x as bf16.
        h = x_ref[...].astype(jnp.bfloat16)
        for i in range(num_layers):
            w = param_refs[2 * i][...]        # bf16 (in, out) -> MXU operand
            b = param_refs[2 * i + 1][...]    # f32  (1, out)
            acc = jnp.dot(h, w, preferred_element_type=jnp.float32) + b
            act = acts[i] if i < len(acts) else None
            if act is not None:
                acc = act(acc)
            # Hidden activations go back to bf16 for the next MXU matmul;
            # the final layer output stays f32.
            h = acc.astype(jnp.bfloat16) if i + 1 < num_layers else acc
        out_ref[...] = h.astype(out_ref.dtype)

    return kernel


def prepare_flexible_classifier(params, activation_names):
    """One-time parameter prep (call once at load time, reuse every forward).

    * Weights -> bf16 (in, out); biases -> f32 (1, out).
    * Each layer's output width is zero-padded to a multiple of 128 only when
      the pad factor is <= 2 (lane-dense MXU K/N and output store). Exact:
      padded units only feed zero-padded downstream weight rows, and padded
      output columns are sliced off.
    """
    num_layers = len(params)
    input_size = params[0][0].shape[0]
    num_classes = params[-1][0].shape[1]

    widths = []
    for w, _ in params:
        out_w = w.shape[1]
        padded = _round_up(out_w, 128)
        widths.append(padded if padded <= 2 * out_w else out_w)

    flat_params = []
    prev = input_size  # input columns are never padded (x streams as-is)
    for li, (w, b) in enumerate(params):
        out_w = w.shape[1]
        pw = jnp.zeros((prev, widths[li]), jnp.bfloat16)
        pw = pw.at[: w.shape[0], :out_w].set(w.astype(jnp.bfloat16))
        pb = jnp.zeros((1, widths[li]), jnp.float32)
        pb = pb.at[0, :out_w].set(b.astype(jnp.float32))
        flat_params += [pw, pb]
        prev = widths[li]

    resident_bytes = sum(int(a.size) * a.dtype.itemsize for a in flat_params)

    # Widest simultaneously-live per-row intermediates: bf16 input of layer i
    # + f32 accumulator of layer i (+ bf16 copy for the next layer).
    live_inter = 6 * input_size  # f32 x tile + its bf16 cast
    prev = input_size
    for li in range(num_layers):
        cur = widths[li]
        nxt_copy = 2 * cur if li + 1 < num_layers else 0
        live_inter = max(live_inter, 2 * prev + 4 * cur + nxt_copy)
        prev = cur

    return {
        "flat_params": flat_params,
        "widths": widths,
        "input_size": input_size,
        "num_classes": num_classes,
        "out_width": widths[-1],
        "num_layers": num_layers,
        "activation_names": tuple(activation_names),
        "resident_bytes": int(resident_bytes),
        "live_inter_per_row": int(live_inter),
    }


def flexible_classifier_forward(x, prepared):
    """Runs the fused, batch-tiled MLP Pallas kernel with prepared params."""
    batch, input_size = x.shape
    assert input_size == prepared["input_size"]
    num_layers = prepared["num_layers"]
    num_classes = prepared["num_classes"]
    out_width = prepared["out_width"]
    flat_params = prepared["flat_params"]
    activation_names = prepared["activation_names"]
    resident = prepared["resident_bytes"]

    # ---- Generation-aware VMEM budget, told to the compiler below.
    cap = _vmem_capacity_bytes()
    budget = int(0.75 * cap)
    slack = 1 << 20  # fixed overhead / layout slack

    per_row = (2 * 4 * input_size            # double-buffered f32 x tile
               + 2 * 4 * out_width           # double-buffered f32 out tile
               + prepared["live_inter_per_row"])
    per_row = int(per_row * 1.2)             # 20% headroom

    if resident + 8 * per_row + slack > budget:
        # TODO(synk): N-tile the widest layer (stream its weight blocks) when
        # resident params alone overflow VMEM; for now only raise the limit.
        budget = min(int(0.95 * cap), resident + 8 * per_row + slack)

    # ---- Batch tile: biggest that fits, minimising last-tile padding; force
    # >= 2 grid steps for large batches so v7x's two TensorCores both work.
    avail = max(budget - resident - slack, per_row * 8)
    tb_cap = max(8, min(_TB_MAX, (avail // per_row) // 8 * 8))
    n_steps = _cdiv(batch, tb_cap)
    if n_steps == 1 and batch >= 512:
        n_steps = 2
    tb = min(tb_cap, _round_up(_cdiv(batch, n_steps), 8))
    padded_batch = _round_up(batch, tb)
    if padded_batch != batch:
        x = jnp.pad(x, ((0, padded_batch - batch), (0, 0)))
    grid = (padded_batch // tb,)

    # ---- Advisory cost estimate for the XLA scheduler.
    flops = 0
    transcendentals = 0
    prev = input_size
    for li in range(num_layers):
        cur = prepared["widths"][li]
        flops += 2 * padded_batch * prev * cur
        name = activation_names[li] if li < len(activation_names) else None
        if name in ("tanh", "sigmoid", "gelu"):
            transcendentals += padded_batch * cur
        prev = cur
    bytes_accessed = (padded_batch * input_size * 4
                      + resident
                      + padded_batch * out_width * 4)
    cost = pl.CostEstimate(flops=flops, transcendentals=transcendentals,
                           bytes_accessed=bytes_accessed)

    kernel = _make_mlp_kernel(activation_names, num_layers)

    def _call(single_buffer_params):
        # x/out stream with the grid; weights/biases are VMEM-resident with a
        # constant (0, 0) index_map (default-arg capture avoids late binding).
        in_specs = [pl.BlockSpec((tb, input_size), lambda i: (i, 0))]
        for a in flat_params:
            if single_buffer_params:
                spec = pl.BlockSpec(a.shape, lambda i, _nd=a.ndim: (0,) * _nd,
                                    pipeline_mode=pl.Buffered(1))
            else:
                spec = pl.BlockSpec(a.shape, lambda i, _nd=a.ndim: (0,) * _nd)
            in_specs.append(spec)
        out_spec = pl.BlockSpec((tb, out_width), lambda i: (i, 0))
        return pl.pallas_call(
            kernel,
            out_shape=jax.ShapeDtypeStruct((padded_batch, out_width),
                                           jnp.float32),
            grid=grid,
            in_specs=in_specs,
            out_specs=out_spec,
            compiler_params=pltpu.CompilerParams(
                dimension_semantics=("parallel",),
                vmem_limit_bytes=int(budget),
            ),
            cost_estimate=cost,
        )(x, *flat_params)

    try:
        out = _call(single_buffer_params=True)
    except Exception:
        # Fallback for environments without pipeline_mode/Buffered support:
        # default double-buffered resident params (correct, more VMEM).
        out = _call(single_buffer_params=False)

    return out[:batch, :num_classes]


def init_linear_params(key, in_size, out_size):
    """PyTorch nn.Linear-style init: U(-1/sqrt(fan_in), 1/sqrt(fan_in))."""
    kw, kb = jax.random.split(key)
    bound = 1.0 / math.sqrt(in_size)
    # Stored directly as (in, out) so the kernel computes x @ W.
    w = jax.random.uniform(kw, (in_size, out_size), jnp.float32, -bound, bound)
    b = jax.random.uniform(kb, (out_size,), jnp.float32, -bound, bound)
    return w, b


def reference_forward_f32(x, params, activation_names):
    """Plain-JAX f32 reference of the PyTorch forward."""
    h = x
    for i, (w, b) in enumerate(params):
        h = h @ w + b
        if i < len(activation_names):
            fn = _ACTIVATIONS[activation_names[i]]
            if fn is not None:
                h = fn(h)
    return h


def reference_forward_bf16(x, params, activation_names):
    """Reference mirroring the kernel's bf16-MXU / f32-accumulate path."""
    h = x.astype(jnp.bfloat16)
    n = len(params)
    for i, (w, b) in enumerate(params):
        acc = jnp.dot(h, w.astype(jnp.bfloat16),
                      preferred_element_type=jnp.float32) + b.astype(jnp.float32)
        fn = _ACTIVATIONS[activation_names[i]] if i < len(activation_names) else None
        if fn is not None:
            acc = fn(acc)
        h = acc.astype(jnp.bfloat16) if i + 1 < n else acc
    return h


if __name__ == "__main__":
    # Small shapes consistent with the module: an MLP classifier.
    batch = 8
    input_size = 32
    hidden_sizes = [64, 32]
    activation_names = ["relu", "tanh"]  # matches len(hidden_sizes)
    num_classes = 8

    key = jax.random.PRNGKey(0)
    k_x, *k_layers = jax.random.split(key, 2 + len(hidden_sizes))

    x = jax.random.normal(k_x, (batch, input_size), jnp.float32)

    # Build parameters: hidden layers then output layer.
    params = []
    prev = input_size
    for size, k in zip(hidden_sizes, k_layers[:-1]):
        params.append(init_linear_params(k, prev, size))
        prev = size
    params.append(init_linear_params(k_layers[-1], prev, num_classes))

    # One-time parameter preparation (hoisted out of the per-call path).
    prepared = prepare_flexible_classifier(params, activation_names)

    out = flexible_classifier_forward(x, prepared)
    out = jax.block_until_ready(out)

    assert out.shape == (batch, num_classes)

    # Tight check against a reference using the same bf16-MXU / f32-acc path.
    ref_bf16 = reference_forward_bf16(x, params, activation_names)
    assert jnp.allclose(out, ref_bf16, atol=2e-3, rtol=2e-3), \
        "mismatch vs bf16-path reference"

    # Loose check against the exact f32 PyTorch-semantics reference
    # (bf16 MXU inputs introduce small, expected numeric drift).
    ref_f32 = reference_forward_f32(x, params, activation_names)
    assert jnp.allclose(out, ref_f32, atol=5e-2, rtol=5e-2), \
        "mismatch vs f32 reference"

    print("KERNEL_OK")
</pallas_src>

<mosaic_0001>
module attributes {stable_mosaic.version = 11 : i64} {
  func.func @kernel(%arg0: i32, %arg1: memref<8x32xf32, #tpu.memory_space<vmem>>, %arg2: memref<32x128xbf16, #tpu.memory_space<vmem>>, %arg3: memref<1x128xf32, #tpu.memory_space<vmem>>, %arg4: memref<128x32xbf16, #tpu.memory_space<vmem>>, %arg5: memref<1x32xf32, #tpu.memory_space<vmem>>, %arg6: memref<32x8xbf16, #tpu.memory_space<vmem>>, %arg7: memref<1x8xf32, #tpu.memory_space<vmem>>, %arg8: memref<8x8xf32, #tpu.memory_space<vmem>>) attributes {dimension_semantics = [#tpu.dimension_semantics<parallel>], iteration_bounds = array<i64: 1>, scalar_prefetch = 0 : i64, scratch_operands = 0 : i64, tpu.core_type = #tpu.core_type<tc>, window_params = [{transform_indices = @transform_0, window_bounds = array<i64: 8, 32>}, {pipeline_mode = #tpu.pipeline_mode<synchronous>, transform_indices = @transform_1, window_bounds = array<i64: 32, 128>}, {pipeline_mode = #tpu.pipeline_mode<synchronous>, transform_indices = @transform_2, window_bounds = array<i64: 1, 128>}, {pipeline_mode = #tpu.pipeline_mode<synchronous>, transform_indices = @transform_3, window_bounds = array<i64: 128, 32>}, {pipeline_mode = #tpu.pipeline_mode<synchronous>, transform_indices = @transform_4, window_bounds = array<i64: 1, 32>}, {pipeline_mode = #tpu.pipeline_mode<synchronous>, transform_indices = @transform_5, window_bounds = array<i64: 32, 8>}, {pipeline_mode = #tpu.pipeline_mode<synchronous>, transform_indices = @transform_6, window_bounds = array<i64: 1, 8>}, {transform_indices = @transform_7, window_bounds = array<i64: 8, 8>}]} {
    %c0 = arith.constant 0 : index
    %c0_0 = arith.constant 0 : index
    %0 = vector.load %arg1[%c0, %c0_0] : memref<8x32xf32, #tpu.memory_space<vmem>>, vector<8x32xf32>
    %1 = arith.truncf %0 : vector<8x32xf32> to vector<8x32xbf16>
    %c0_1 = arith.constant 0 : index
    %c0_2 = arith.constant 0 : index
    %2 = vector.load %arg2[%c0_1, %c0_2] : memref<32x128xbf16, #tpu.memory_space<vmem>>, vector<32x128xbf16>
    %c0_3 = arith.constant 0 : index
    %c0_4 = arith.constant 0 : index
    %3 = vector.load %arg3[%c0_3, %c0_4] : memref<1x128xf32, #tpu.memory_space<vmem>>, vector<1x128xf32>
    %cst = arith.constant dense<0.000000e+00> : vector<8x128xf32>
    %4 = tpu.matmul %1, %2, %cst {dimension_numbers = #tpu.dot_dimension_numbers<[1], [0], [0], [1], [0, 0, 1, 1], [], []>} : vector<8x32xbf16>, vector<32x128xbf16>, vector<8x128xf32> -> vector<8x128xf32>
    %5 = vector.broadcast %3 : vector<1x128xf32> to vector<8x128xf32>
    %6 = arith.addf %4, %5 : vector<8x128xf32>
    %cst_5 = arith.constant 0.000000e+00 : f32
    %7 = vector.broadcast %cst_5 : f32 to vector<8x128xf32>
    %8 = arith.maximumf %6, %7 : vector<8x128xf32>
    %9 = arith.truncf %8 : vector<8x128xf32> to vector<8x128xbf16>
    %c0_6 = arith.constant 0 : index
    %c0_7 = arith.constant 0 : index
    %10 = vector.load %arg4[%c0_6, %c0_7] : memref<128x32xbf16, #tpu.memory_space<vmem>>, vector<128x32xbf16>
    %c0_8 = arith.constant 0 : index
    %c0_9 = arith.constant 0 : index
    %11 = vector.load %arg5[%c0_8, %c0_9] : memref<1x32xf32, #tpu.memory_space<vmem>>, vector<1x32xf32>
    %cst_10 = arith.constant dense<0.000000e+00> : vector<8x32xf32>
    %12 = tpu.matmul %9, %10, %cst_10 {dimension_numbers = #tpu.dot_dimension_numbers<[1], [0], [0], [1], [0, 0, 1, 1], [], []>} : vector<8x128xbf16>, vector<128x32xbf16>, vector<8x32xf32> -> vector<8x32xf32>
    %13 = vector.broadcast %11 : vector<1x32xf32> to vector<8x32xf32>
    %14 = arith.addf %12, %13 : vector<8x32xf32>
    %15 = math.tanh %14 : vector<8x32xf32>
    %16 = arith.truncf %15 : vector<8x32xf32> to vector<8x32xbf16>
    %c0_11 = arith.constant 0 : index
    %c0_12 = arith.constant 0 : index
    %17 = vector.load %arg6[%c0_11, %c0_12] : memref<32x8xbf16, #tpu.memory_space<vmem>>, vector<32x8xbf16>
    %c0_13 = arith.constant 0 : index
    %c0_14 = arith.constant 0 : index
    %18 = vector.load %arg7[%c0_13, %c0_14] : memref<1x8xf32, #tpu.memory_space<vmem>>, vector<1x8xf32>
    %cst_15 = arith.constant dense<0.000000e+00> : vector<8x8xf32>
    %19 = tpu.matmul %16, %17, %cst_15 {dimension_numbers = #tpu.dot_dimension_numbers<[1], [0], [0], [1], [0, 0, 1, 1], [], []>} : vector<8x32xbf16>, vector<32x8xbf16>, vector<8x8xf32> -> vector<8x8xf32>
    %20 = vector.broadcast %18 : vector<1x8xf32> to vector<8x8xf32>
    %21 = arith.addf %19, %20 : vector<8x8xf32>
    %c0_16 = arith.constant 0 : index
    %c0_17 = arith.constant 0 : index
    %22 = vector.load %arg8[%c0_16, %c0_17] : memref<8x8xf32, #tpu.memory_space<vmem>>, vector<8x8xf32>
    tpu.vector_store %arg8[%c0_16, %c0_17], %21 {strides = array<i32>} : memref<8x8xf32, #tpu.memory_space<vmem>>, vector<8x8xf32>,
    return
  }
  func.func @transform_0(%arg0: i32) -> (i32, i32) {
    %c0_i32 = arith.constant 0 : i32
    %c0_i32_0 = arith.constant 0 : i32
    return %arg0, %c0_i32 : i32, i32
  }
  func.func @transform_1(%arg0: i32) -> (i32, i32) {
    %c0_i32 = arith.constant 0 : i32
    %c0_i32_0 = arith.constant 0 : i32
    %c0_i32_1 = arith.constant 0 : i32
    return %c0_i32, %c0_i32_0 : i32, i32
  }
  func.func @transform_2(%arg0: i32) -> (i32, i32) {
    %c0_i32 = arith.constant 0 : i32
    %c0_i32_0 = arith.constant 0 : i32
    %c0_i32_1 = arith.constant 0 : i32
    return %c0_i32, %c0_i32_0 : i32, i32
  }
  func.func @transform_3(%arg0: i32) -> (i32, i32) {
    %c0_i32 = arith.constant 0 : i32
    %c0_i32_0 = arith.constant 0 : i32
    %c0_i32_1 = arith.constant 0 : i32
    return %c0_i32, %c0_i32_0 : i32, i32
  }
  func.func @transform_4(%arg0: i32) -> (i32, i32) {
    %c0_i32 = arith.constant 0 : i32
    %c0_i32_0 = arith.constant 0 : i32
    %c0_i32_1 = arith.constant 0 : i32
    return %c0_i32, %c0_i32_0 : i32, i32
  }
  func.func @transform_5(%arg0: i32) -> (i32, i32) {
    %c0_i32 = arith.constant 0 : i32
    %c0_i32_0 = arith.constant 0 : i32
    %c0_i32_1 = arith.constant 0 : i32
    return %c0_i32, %c0_i32_0 : i32, i32
  }
  func.func @transform_6(%arg0: i32) -> (i32, i32) {
    %c0_i32 = arith.constant 0 : i32
    %c0_i32_0 = arith.constant 0 : i32
    %c0_i32_1 = arith.constant 0 : i32
    return %c0_i32, %c0_i32_0 : i32, i32
  }
  func.func @transform_7(%arg0: i32) -> (i32, i32) {
    %c0_i32 = arith.constant 0 : i32
    %c0_i32_0 = arith.constant 0 : i32
    return %arg0, %c0_i32 : i32, i32
  }
}

module attributes {stable_mosaic.version = 11 : i64} {
  func.func @kernel(%arg0: i32, %arg1: memref<8x32xf32, #tpu.memory_space<vmem>>, %arg2: memref<32x128xbf16, #tpu.memory_space<vmem>>, %arg3: memref<1x128xf32, #tpu.memory_space<vmem>>, %arg4: memref<128x32xbf16, #tpu.memory_space<vmem>>, %arg5: memref<1x32xf32, #tpu.memory_space<vmem>>, %arg6: memref<32x8xbf16, #tpu.memory_space<vmem>>, %arg7: memref<1x8xf32, #tpu.memory_space<vmem>>, %arg8: memref<8x8xf32, #tpu.memory_space<vmem>>) attributes {dimension_semantics = [#tpu.dimension_semantics<parallel>], iteration_bounds = array<i64: 1>, scalar_prefetch = 0 : i64, scratch_operands = 0 : i64, tpu.core_type = #tpu.core_type<tc>, window_params = [{transform_indices = @transform_0, window_bounds = array<i64: 8, 32>}, {pipeline_mode = #tpu.pipeline_mode<synchronous>, transform_indices = @transform_1, window_bounds = array<i64: 32, 128>}, {pipeline_mode = #tpu.pipeline_mode<synchronous>, transform_indices = @transform_2, window_bounds = array<i64: 1, 128>}, {pipeline_mode = #tpu.pipeline_mode<synchronous>, transform_indices = @transform_3, window_bounds = array<i64: 128, 32>}, {pipeline_mode = #tpu.pipeline_mode<synchronous>, transform_indices = @transform_4, window_bounds = array<i64: 1, 32>}, {pipeline_mode = #tpu.pipeline_mode<synchronous>, transform_indices = @transform_5, window_bounds = array<i64: 32, 8>}, {pipeline_mode = #tpu.pipeline_mode<synchronous>, transform_indices = @transform_6, window_bounds = array<i64: 1, 8>}, {transform_indices = @transform_7, window_bounds = array<i64: 8, 8>}]} {
    %c0 = arith.constant 0 : index
    %c0_0 = arith.constant 0 : index
    %0 = vector.load %arg1[%c0, %c0_0] : memref<8x32xf32, #tpu.memory_space<vmem>>, vector<8x32xf32>
    %1 = arith.truncf %0 : vector<8x32xf32> to vector<8x32xbf16>
    %c0_1 = arith.constant 0 : index
    %c0_2 = arith.constant 0 : index
    %2 = vector.load %arg2[%c0_1, %c0_2] : memref<32x128xbf16, #tpu.memory_space<vmem>>, vector<32x128xbf16>
    %c0_3 = arith.constant 0 : index
    %c0_4 = arith.constant 0 : index
    %3 = vector.load %arg3[%c0_3, %c0_4] : memref<1x128xf32, #tpu.memory_space<vmem>>, vector<1x128xf32>
    %cst = arith.constant dense<0.000000e+00> : vector<8x128xf32>
    %4 = tpu.matmul %1, %2, %cst {dimension_numbers = #tpu.dot_dimension_numbers<[1], [0], [0], [1], [0, 0, 1, 1], [], []>} : vector<8x32xbf16>, vector<32x128xbf16>, vector<8x128xf32> -> vector<8x128xf32>
    %5 = vector.broadcast %3 : vector<1x128xf32> to vector<8x128xf32>
    %6 = arith.addf %4, %5 : vector<8x128xf32>
    %cst_5 = arith.constant 0.000000e+00 : f32
    %7 = vector.broadcast %cst_5 : f32 to vector<8x128xf32>
    %8 = arith.maximumf %6, %7 : vector<8x128xf32>
    %9 = arith.truncf %8 : vector<8x128xf32> to vector<8x128xbf16>
    %c0_6 = arith.constant 0 : index
    %c0_7 = arith.constant 0 : index
    %10 = vector.load %arg4[%c0_6, %c0_7] : memref<128x32xbf16, #tpu.memory_space<vmem>>, vector<128x32xbf16>
    %c0_8 = arith.constant 0 : index
    %c0_9 = arith.constant 0 : index
    %11 = vector.load %arg5[%c0_8, %c0_9] : memref<1x32xf32, #tpu.memory_space<vmem>>, vector<1x32xf32>
    %cst_10 = arith.constant dense<0.000000e+00> : vector<8x32xf32>
    %12 = tpu.matmul %9, %10, %cst_10 {dimension_numbers = #tpu.dot_dimension_numbers<[1], [0], [0], [1], [0, 0, 1, 1], [], []>} : vector<8x128xbf16>, vector<128x32xbf16>, vector<8x32xf32> -> vector<8x32xf32>
    %13 = vector.broadcast %11 : vector<1x32xf32> to vector<8x32xf32>
    %14 = arith.addf %12, %13 : vector<8x32xf32>
    %15 = math.tanh %14 : vector<8x32xf32>
    %16 = arith.truncf %15 : vector<8x32xf32> to vector<8x32xbf16>
    %c0_11 = arith.constant 0 : index
    %c0_12 = arith.constant 0 : index
    %17 = vector.load %arg6[%c0_11, %c0_12] : memref<32x8xbf16, #tpu.memory_space<vmem>>, vector<32x8xbf16>
    %c0_13 = arith.constant 0 : index
    %c0_14 = arith.constant 0 : index
    %18 = vector.load %arg7[%c0_13, %c0_14] : memref<1x8xf32, #tpu.memory_space<vmem>>, vector<1x8xf32>
    %cst_15 = arith.constant dense<0.000000e+00> : vector<8x8xf32>
    %19 = tpu.matmul %16, %17, %cst_15 {dimension_numbers = #tpu.dot_dimension_numbers<[1], [0], [0], [1], [0, 0, 1, 1], [], []>} : vector<8x32xbf16>, vector<32x8xbf16>, vector<8x8xf32> -> vector<8x8xf32>
    %20 = vector.broadcast %18 : vector<1x8xf32> to vector<8x8xf32>
    %21 = arith.addf %19, %20 : vector<8x8xf32>
    %c0_16 = arith.constant 0 : index
    %c0_17 = arith.constant 0 : index
    %22 = vector.load %arg8[%c0_16, %c0_17] : memref<8x8xf32, #tpu.memory_space<vmem>>, vector<8x8xf32>
    tpu.vector_store %arg8[%c0_16, %c0_17], %21 {strides = array<i32>} : memref<8x8xf32, #tpu.memory_space<vmem>>, vector<8x8xf32>,
    return
  }
  func.func @transform_0(%arg0: i32) -> (i32, i32) {
    %c0_i32 = arith.constant 0 : i32
    %c0_i32_0 = arith.constant 0 : i32
    return %arg0, %c0_i32 : i32, i32
  }
  func.func @transform_1(%arg0: i32) -> (i32, i32) {
    %c0_i32 = arith.constant 0 : i32
    %c0_i32_0 = arith.constant 0 : i32
    %c0_i32_1 = arith.constant 0 : i32
    return %c0_i32, %c0_i32_0 : i32, i32
  }
  func.func @transform_2(%arg0: i32) -> (i32, i32) {
    %c0_i32 = arith.constant 0 : i32
    %c0_i32_0 = arith.constant 0 : i32
    %c0_i32_1 = arith.constant 0 : i32
    return %c0_i32, %c0_i32_0 : i32, i32
  }
  func.func @transform_3(%arg0: i32) -> (i32, i32) {
    %c0_i32 = arith.constant 0 : i32
    %c0_i32_0 = arith.constant 0 : i32
    %c0_i32_1 = arith.constant 0 : i32
    return %c0_i32, %c0_i32_0 : i32, i32
  }
  func.func @transform_4(%arg0: i32) -> (i32, i32) {
    %c0_i32 = arith.constant 0 : i32
    %c0_i32_0 = arith.constant 0 : i32
    %c0_i32_1 = arith.constant 0 : i32
    return %c0_i32, %c0_i32_0 : i32, i32
  }
  func.func @transform_5(%arg0: i32) -> (i32, i32) {
    %c0_i32 = arith.constant 0 : i32
    %c0_i32_0 = arith.constant 0 : i32
    %c0_i32_1 = arith.constant 0 : i32
    return %c0_i32, %c0_i32_0 : i32, i32
  }
  func.func @transform_6(%arg0: i32) -> (i32, i32) {
    %c0_i32 = arith.constant 0 : i32
    %c0_i32_0 = arith.constant 0 : i32
    %c0_i32_1 = arith.constant 0 : i32
    return %c0_i32, %c0_i32_0 : i32, i32
  }
  func.func @transform_7(%arg0: i32) -> (i32, i32) {
    %c0_i32 = arith.constant 0 : i32
    %c0_i32_0 = arith.constant 0 : i32
    return %arg0, %c0_i32 : i32, i32
  }
}

</mosaic_0001>

<bundles_post_ra>
// kernel: tpu_custom_call.1
= control target key start
LH: loop header
LB: loop body
LE: loop exit
PB: predicated region body
PF: predicated region fallthrough
CT: control target
= control target key end

     0   :  { %v403_v1 = vmov 0.0   ;;  %vm404_vm0 = vmmov 0   ;;  %vm53_vm1 = vcmask 261120   ;;  %s511_s0 = inlined_call_operand.vmem [shape: f32[8,32], index: 0, kind: input, shape index: {}]   ;;  %s512_s1 = inlined_call_operand.vmem [shape: bf16[32,128], index: 1, kind: input, shape index: {}]   ;;  %s513_s2 = inlined_call_operand.vmem [shape: f32[1,128], index: 2, kind: input, shape index: {}]   ;;  %s514_s3 = inlined_call_operand.vmem [shape: bf16[128,32], index: 3, kind: input, shape index: {}]   ;;  %s515_s4 = inlined_call_operand.vmem [shape: f32[1,32], index: 4, kind: input, shape index: {}]   ;;  %s516_s5 = inlined_call_operand.vmem [shape: bf16[32,8], index: 5, kind: input, shape index: {}]   ;;  %s517_s6 = inlined_call_operand.vmem [shape: f32[1,8], index: 6, kind: input, shape index: {}]   ;;  %s518_s7 = inlined_call_operand.hbm [shape: f32[8,8], index: 7, kind: output, shape index: {}]  }
   0x1   :  { %v365_v0 = vld [vmem:[%s512_s1] sm:$0xff]   ;;  %326 = vmatprep.subr.bf16.mxu0 %v403_v1  ;;  %v366_v2 = vld [vmem:[%s512_s1 + $0x8] sm:$0xff]   ;;  %334 = vmatprep.subr.bf16.mxu1 %v403_v1  ;;  %v369_v7 = vld [vmem:[%s514_s3 + $0x10] sm:$0xff]  }
   0x2   :  { %327 = vmatpush3.bf16.msra.mxu0 %v365_v0  ;;  %330 = vmatprep.mubr.msk.bf16.mxu0 %vm404_vm0, %v403_v1  ;;  %v28_v3 = vld [vmem:[%s511_s0] sm:$0xff]  ;;  %v368_v6 = vld [vmem:[%s514_s3 + $0x8] sm:$0xff]  }
   0x3   :  { %328 = vmatprep.subr.bf16.mxu0 %v403_v1  ;;  %v367_v4 = vld [vmem:[%s514_s3] sm:$0xff]   ;;  %350 = vmatprep.mubr.msk.bf16.mxu1 %vm404_vm0, %v403_v1  ;;  %v29_v5 = vpack.c.bf16 %v28_v3, %v28_v3 }
   0x4   :  { %335 = vmatpush3.bf16.msra.mxu1 %v367_v4 }
   0x5   :  { %336 = vmatprep.subr.bf16.mxu1 %v403_v1 }
   0x6   :  { %329 = vmatpush3.bf16.msra.mxu0 %v366_v2 }
   0x7   :  { %354 = vmatprep.subr.bf16.mxu0 %v403_v1 }
   0x8   :  { %337 = vmatpush3.bf16.msra.mxu1 %v368_v6 }
   0x9   :  { %331 = vmatmul.mubr.msk.bf16.vlgmr.msra.gmra.mrb[0].mxu0 %vm53_vm1, %v29_v5  ;;  %338 = vmatprep.subr.bf16.mxu1 %v403_v1 }
   0xa   :  { %358 = vmatprep.mubr.msk.bf16.mxu0 %vm404_vm0, %v403_v1 }
   0xb   :  { %12 = vsyncpa [#allocation3], 0  ;;  %v370_v8 = vld [vmem:[%s514_s3 + $0x18] sm:$0xff]   ;;  %v371_v9 = vld [vmem:[%s514_s3 + $0x20] sm:$0xff]   ;;  %vm278_vm2 = vcmask 64512  }
   0xc   :  { %339 = vmatpush3.bf16.msra.mxu1 %v369_v7  ;;  %v372_v10 = vld [vmem:[%s514_s3 + $0x28] sm:$0xff]   ;;  %v373_v11 = vld [vmem:[%s514_s3 + $0x30] sm:$0xff]   ;;  %v374_v12 = vld [vmem:[%s514_s3 + $0x38] sm:$0xff]  }
   0xd   :  { %340 = vmatprep.subr.bf16.mxu1 %v403_v1  ;;  %v294_v13 = vld [vmem:[%s513_s2] ss:$0 sm:$0xff]  ;;  %v376_v22 = vld [vmem:[%s516_s5 + $0x8] sm:$0xff]  }
   0xe   :  { %v375_v21 = vld [vmem:[%s516_s5] sm:$0xff]   ;;  %s405_s5 = smov [#allocation2]  }
   0xf   :  { %355 = vmatpush3.bf16.msra.mxu0 %v375_v21  ;;  %v298_v23 = vld [vmem:[%s515_s4] ss:$0 sm:$0xff]  ;;  %s286_s29 = sshll.u32 %s405_s5, 4  ;;  %s287_s29 = int_to_ptr.vmem [resolvable:$true] %s286_s29 }
  0x10   :  { %341 = vmatpush3.bf16.msra.mxu1 %v370_v8  ;;  %356 = vmatprep.subr.bf16.mxu0 %v403_v1  ;;  %v307_v31 = vld [vmem:[%s517_s6] ss:$0 sm:$0xff]  ;;  %s379_s4 = scalar_lea.vmem %s287_s29, 128  ;;  %p384_p1 = scmp.lt.s32.totalorder %s287_s29, %s287_s29 }
  0x11   :  { %342 = vmatprep.subr.bf16.mxu1 %v403_v1  ;;  %p380_p0 = scmp.ne.s32.totalorder %s287_s29, %s379_s4  ;;  %p385_p2 = scmp.lt.s32.totalorder %s379_s4, %s379_s4 }
  0x13   :  { %357 = vmatpush3.bf16.msra.mxu0 %v376_v22  ;;  %p386_p3 = por %p385_p2, %p384_p1 }
  0x14   :  { %343 = vmatpush3.bf16.msra.mxu1 %v371_v9 }
  0x15   :  { %344 = vmatprep.subr.bf16.mxu1 %v403_v1  ;;  %p387_p4 = pnand %p386_p3, %p380_p0 }
  0x18   :  { %345 = vmatpush3.bf16.msra.mxu1 %v372_v10 }
  0x19   :  { %346 = vmatprep.subr.bf16.mxu1 %v403_v1 }
  0x1c   :  { %347 = vmatpush3.bf16.msra.mxu1 %v373_v11 }
  0x1d   :  { %348 = vmatprep.subr.bf16.mxu1 %v403_v1 }
  0x20   :  { %349 = vmatpush3.bf16.msra.mxu1 %v374_v12 }
  0xdc   :  { %v91_v14 = vpop.f32.mrb[0].mxu0 }
  0xdd   :  { %v92_v15 = vadd.f32 %v294_v13, %v91_v14  ;;  %v332_v16 = vpop.f32.mrb[1].mxu0 }
  0xde   :  { %v94_v17 = vpop.f32.mrb[2].mxu0 }
  0xdf   :  { %v97_v18 = vmax.f32 %v92_v15, 0.0  ;;  %v333_v19 = vpop.f32.mrb[3].mxu0 }
  0xe1   :  { %v98_v20 = vpack.c.bf16 %v97_v18, %v97_v18 }
  0xe3   :  { %351 = vmatmul.mubr.bf16.vlgmr.msra.gmra.mrb[0].mxu1 %v98_v20 }
 0x1b6   :  { %v204_v24 = vpop.f32.mrb[0].mxu1 }
 0x1b7   :  { %v205_v25 = vadd.f32 %v298_v23, %v204_v24  ;;  %v352_v26 = vpop.f32.mrb[1].mxu1 }
 0x1b8   :  { %v207_v27 = vpop.f32.mrb[2].mxu1 }
 0x1b9   :  { %377 = vtanh.f32 %v205_v25  ;;  %v353_v28 = vpop.f32.mrb[3].mxu1 }
 0x1c3   :  { %v378_v29 = vpop.eup %377 }
 0x1c4   :  { %v211_v30 = vpack.c.bf16 %v378_v29, %v378_v29 }
 0x1c6   :  { %359 = vmatmul.mubr.msk.bf16.vlgmr.msra.gmra.mrb[4].mxu0 %vm53_vm1, %v211_v30 }
 0x299   :  { %v272_v32 = vpop.f32.mrb[4].mxu0 }
 0x29a   :  { %v273_v33 = vadd.f32 %v307_v31, %v272_v32  ;;  %v360_v34 = vpop.f32.mrb[5].mxu0 }
 0x29b   :  { %v275_v35 = vpop.f32.mrb[6].mxu0 }
 0x29c   :  { %v361_v36 = vpop.f32.mrb[7].mxu0  ;;  %279 = vst.msk [vmem:[#allocation2] sm:$0xff] %vm278_vm2, %v273_v33 }
 0x29d   :  { %390 = shalt.err (!%p387_p4)
}
 0x29e   :  { %s391_s6 = scalar_lea.hbm %s518_s7, 128 }
 0x29f   :  { %p392_p5 = scmp.ne.s32.totalorder %s518_s7, %s391_s6  ;;  %p395_p6 = scmp.lt.u32.totalorder %s391_s6, %s518_s7 }
 0x2a1   :  { %p397_p7 = pnand %p395_p6, %p392_p5 }
 0x2a3   :  { %400 = shalt.err (!%p397_p7)
}
 0x2a4   :  { %289 = dma.vmem_to_hbm [thread:$0]  %s287_s29, 128, %s518_s7, [#allocation3]  }
 0x2a5   :  { %401 = dma.done.wait [#allocation3], 128  }
 0x2a6   :  { %402 = vsyncadd [#allocation3], 4294967168 }
 0x2a7   :  { %293 = vsyncpa [#allocation3], 1 }

// kernel: tpu_custom_call.1
= control target key start
LH: loop header
LB: loop body
LE: loop exit
PB: predicated region body
PF: predicated region fallthrough
CT: control target
= control target key end

     0   :  { %v403_v1 = vmov 0.0   ;;  %vm404_vm0 = vmmov 0   ;;  %vm53_vm1 = vcmask 261120   ;;  %s511_s0 = inlined_call_operand.vmem [shape: f32[8,32], index: 0, kind: input, shape index: {}]   ;;  %s512_s1 = inlined_call_operand.vmem [shape: bf16[32,128], index: 1, kind: input, shape index: {}]   ;;  %s513_s2 = inlined_call_operand.vmem [shape: f32[1,128], index: 2, kind: input, shape index: {}]   ;;  %s514_s3 = inlined_call_operand.vmem [shape: bf16[128,32], index: 3, kind: input, shape index: {}]   ;;  %s515_s4 = inlined_call_operand.vmem [shape: f32[1,32], index: 4, kind: input, shape index: {}]   ;;  %s516_s5 = inlined_call_operand.vmem [shape: bf16[32,8], index: 5, kind: input, shape index: {}]   ;;  %s517_s6 = inlined_call_operand.vmem [shape: f32[1,8], index: 6, kind: input, shape index: {}]   ;;  %s518_s7 = inlined_call_operand.hbm [shape: f32[8,8], index: 7, kind: output, shape index: {}]  }
   0x1   :  { %v365_v0 = vld [vmem:[%s512_s1] sm:$0xff]   ;;  %326 = vmatprep.subr.bf16.mxu0 %v403_v1  ;;  %v366_v2 = vld [vmem:[%s512_s1 + $0x8] sm:$0xff]   ;;  %334 = vmatprep.subr.bf16.mxu1 %v403_v1  ;;  %v369_v7 = vld [vmem:[%s514_s3 + $0x10] sm:$0xff]  }
   0x2   :  { %327 = vmatpush3.bf16.msra.mxu0 %v365_v0  ;;  %330 = vmatprep.mubr.msk.bf16.mxu0 %vm404_vm0, %v403_v1  ;;  %v28_v3 = vld [vmem:[%s511_s0] sm:$0xff]  ;;  %v368_v6 = vld [vmem:[%s514_s3 + $0x8] sm:$0xff]  }
   0x3   :  { %328 = vmatprep.subr.bf16.mxu0 %v403_v1  ;;  %v367_v4 = vld [vmem:[%s514_s3] sm:$0xff]   ;;  %350 = vmatprep.mubr.msk.bf16.mxu1 %vm404_vm0, %v403_v1  ;;  %v29_v5 = vpack.c.bf16 %v28_v3, %v28_v3 }
   0x4   :  { %335 = vmatpush3.bf16.msra.mxu1 %v367_v4 }
   0x5   :  { %336 = vmatprep.subr.bf16.mxu1 %v403_v1 }
   0x6   :  { %329 = vmatpush3.bf16.msra.mxu0 %v366_v2 }
   0x7   :  { %354 = vmatprep.subr.bf16.mxu0 %v403_v1 }
   0x8   :  { %337 = vmatpush3.bf16.msra.mxu1 %v368_v6 }
   0x9   :  { %331 = vmatmul.mubr.msk.bf16.vlgmr.msra.gmra.mrb[0].mxu0 %vm53_vm1, %v29_v5  ;;  %338 = vmatprep.subr.bf16.mxu1 %v403_v1 }
   0xa   :  { %358 = vmatprep.mubr.msk.bf16.mxu0 %vm404_vm0, %v403_v1 }
   0xb   :  { %12 = vsyncpa [#allocation3], 0  ;;  %v370_v8 = vld [vmem:[%s514_s3 + $0x18] sm:$0xff]   ;;  %v371_v9 = vld [vmem:[%s514_s3 + $0x20] sm:$0xff]   ;;  %vm278_vm2 = vcmask 64512  }
   0xc   :  { %339 = vmatpush3.bf16.msra.mxu1 %v369_v7  ;;  %v372_v10 = vld [vmem:[%s514_s3 + $0x28] sm:$0xff]   ;;  %v373_v11 = vld [vmem:[%s514_s3 + $0x30] sm:$0xff]   ;;  %v374_v12 = vld [vmem:[%s514_s3 + $0x38] sm:$0xff]  }
   0xd   :  { %340 = vmatprep.subr.bf16.mxu1 %v403_v1  ;;  %v294_v13 = vld [vmem:[%s513_s2] ss:$0 sm:$0xff]  ;;  %v376_v22 = vld [vmem:[%s516_s5 + $0x8] sm:$0xff]  }
   0xe   :  { %v375_v21 = vld [vmem:[%s516_s5] sm:$0xff]   ;;  %s405_s5 = smov [#allocation2]  }
   0xf   :  { %355 = vmatpush3.bf16.msra.mxu0 %v375_v21  ;;  %v298_v23 = vld [vmem:[%s515_s4] ss:$0 sm:$0xff]  ;;  %s286_s29 = sshll.u32 %s405_s5, 4  ;;  %s287_s29 = int_to_ptr.vmem [resolvable:$true] %s286_s29 }
  0x10   :  { %341 = vmatpush3.bf16.msra.mxu1 %v370_v8  ;;  %356 = vmatprep.subr.bf16.mxu0 %v403_v1  ;;  %v307_v31 = vld [vmem:[%s517_s6] ss:$0 sm:$0xff]  ;;  %s379_s4 = scalar_lea.vmem %s287_s29, 128  ;;  %p384_p1 = scmp.lt.s32.totalorder %s287_s29, %s287_s29 }
  0x11   :  { %342 = vmatprep.subr.bf16.mxu1 %v403_v1  ;;  %p380_p0 = scmp.ne.s32.totalorder %s287_s29, %s379_s4  ;;  %p385_p2 = scmp.lt.s32.totalorder %s379_s4, %s379_s4 }
  0x13   :  { %357 = vmatpush3.bf16.msra.mxu0 %v376_v22  ;;  %p386_p3 = por %p385_p2, %p384_p1 }
  0x14   :  { %343 = vmatpush3.bf16.msra.mxu1 %v371_v9 }
  0x15   :  { %344 = vmatprep.subr.bf16.mxu1 %v403_v1  ;;  %p387_p4 = pnand %p386_p3, %p380_p0 }
  0x18   :  { %345 = vmatpush3.bf16.msra.mxu1 %v372_v10 }
  0x19   :  { %346 = vmatprep.subr.bf16.mxu1 %v403_v1 }
  0x1c   :  { %347 = vmatpush3.bf16.msra.mxu1 %v373_v11 }
  0x1d   :  { %348 = vmatprep.subr.bf16.mxu1 %v403_v1 }
  0x20   :  { %349 = vmatpush3.bf16.msra.mxu1 %v374_v12 }
  0xdc   :  { %v91_v14 = vpop.f32.mrb[0].mxu0 }
  0xdd   :  { %v92_v15 = vadd.f32 %v294_v13, %v91_v14  ;;  %v332_v16 = vpop.f32.mrb[1].mxu0 }
  0xde   :  { %v94_v17 = vpop.f32.mrb[2].mxu0 }
  0xdf   :  { %v97_v18 = vmax.f32 %v92_v15, 0.0  ;;  %v333_v19 = vpop.f32.mrb[3].mxu0 }
  0xe1   :  { %v98_v20 = vpack.c.bf16 %v97_v18, %v97_v18 }
  0xe3   :  { %351 = vmatmul.mubr.bf16.vlgmr.msra.gmra.mrb[0].mxu1 %v98_v20 }
 0x1b6   :  { %v204_v24 = vpop.f32.mrb[0].mxu1 }
 0x1b7   :  { %v205_v25 = vadd.f32 %v298_v23, %v204_v24  ;;  %v352_v26 = vpop.f32.mrb[1].mxu1 }
 0x1b8   :  { %v207_v27 = vpop.f32.mrb[2].mxu1 }
 0x1b9   :  { %377 = vtanh.f32 %v205_v25  ;;  %v353_v28 = vpop.f32.mrb[3].mxu1 }
 0x1c3   :  { %v378_v29 = vpop.eup %377 }
 0x1c4   :  { %v211_v30 = vpack.c.bf16 %v378_v29, %v378_v29 }
 0x1c6   :  { %359 = vmatmul.mubr.msk.bf16.vlgmr.msra.gmra.mrb[4].mxu0 %vm53_vm1, %v211_v30 }
 0x299   :  { %v272_v32 = vpop.f32.mrb[4].mxu0 }
 0x29a   :  { %v273_v33 = vadd.f32 %v307_v31, %v272_v32  ;;  %v360_v34 = vpop.f32.mrb[5].mxu0 }
 0x29b   :  { %v275_v35 = vpop.f32.mrb[6].mxu0 }
 0x29c   :  { %v361_v36 = vpop.f32.mrb[7].mxu0  ;;  %279 = vst.msk [vmem:[#allocation2] sm:$0xff] %vm278_vm2, %v273_v33 }
 0x29d   :  { %390 = shalt.err (!%p387_p4)
}
 0x29e   :  { %s391_s6 = scalar_lea.hbm %s518_s7, 128 }
 0x29f   :  { %p392_p5 = scmp.ne.s32.totalorder %s518_s7, %s391_s6  ;;  %p395_p6 = scmp.lt.u32.totalorder %s391_s6, %s518_s7 }
 0x2a1   :  { %p397_p7 = pnand %p395_p6, %p392_p5 }
 0x2a3   :  { %400 = shalt.err (!%p397_p7)
}
 0x2a4   :  { %289 = dma.vmem_to_hbm [thread:$0]  %s287_s29, 128, %s518_s7, [#allocation3]  }
 0x2a5   :  { %401 = dma.done.wait [#allocation3], 128  }
 0x2a6   :  { %402 = vsyncadd [#allocation3], 4294967168 }
 0x2a7   :  { %293 = vsyncpa [#allocation3], 1 }

</bundles_post_ra>
